<compile_context>
chip_gen: v7x
topology: tpu7x:2x2x1
jax: 0.10.0
libtpu: 0.0.40
codegen_flags: <defaults>
</compile_context>

<pallas_src>
import functools

import jax
import jax.numpy as jnp
from jax.experimental import pallas as pl
from jax.experimental.pallas import tpu as pltpu

ORDER = 2  # matches `order = 2` in the PyTorch script
_LANES = 128


def _taylor_kernel(x_ref, o_ref, *, order):
    x = x_ref[...]
    # result = x + sum_{i=1..order} x**i / i, computed with explicit multiplies
    # and precomputed reciprocal constants (static unroll; pure VPU).
    if order >= 1:
        acc = x + x                      # clone + (x**1 / 1)
    else:
        acc = x
    p = x
    for i in range(2, order + 1):
        p = p * x                        # x**i via repeated multiply
        acc = acc + p * jnp.asarray(1.0 / i, dtype=x.dtype)
    o_ref[...] = acc


def _taylor_tail(x, order):
    # Plain-jnp path for the (<128 element) unaligned tail; O(lanes) work.
    result = x
    p = x
    if order >= 1:
        result = result + p
    for i in range(2, order + 1):
        p = p * x
        result = result + p * jnp.asarray(1.0 / i, dtype=x.dtype)
    return result


def _pick_tile_rows(rows, itemsize, block_bytes, min_grid=8):
    # Sublane minimum for packed dtypes: 8 (f32), 16 (bf16/f16), 32 (int8/fp8).
    sub = max(8, 32 // itemsize)
    target_rows = max(sub, (block_bytes // (_LANES * itemsize)) // sub * sub)
    if rows <= min_grid * sub:
        # Tiny input: one full-array block (always legal); per-step overhead
        # would dominate if we split further.
        return rows
    # Ensure the grid has at least ~min_grid steps so each TensorCore (v7x
    # megacore) gets several blocks and pipelining reaches steady state.
    capped = ((pl.cdiv(rows, min_grid) + sub - 1) // sub) * sub
    return min(target_rows, max(sub, capped))


@functools.partial(jax.jit, static_argnames=("order", "block_bytes"))
def _taylor_expansion_jit(x, *, order, block_bytes):
    orig_shape = x.shape
    dtype = x.dtype
    itemsize = jnp.dtype(dtype).itemsize
    lanes = _LANES

    flat = x.reshape(-1)                 # metadata-only under jit
    n = flat.size
    n_head = (n // lanes) * lanes

    if n_head == 0:
        # Entire input is smaller than one lane row; no kernel needed.
        return _taylor_tail(flat, order).reshape(orig_shape)

    head = flat if n_head == n else flat[:n_head]
    rows = n_head // lanes
    slab = head.reshape(rows, lanes)

    tile_rows = _pick_tile_rows(rows, itemsize, block_bytes)
    grid = (pl.cdiv(rows, tile_rows),)

    out = pl.pallas_call(
        functools.partial(_taylor_kernel, order=order),
        out_shape=jax.ShapeDtypeStruct((rows, lanes), dtype),
        grid_spec=pltpu.PrefetchScalarGridSpec(
            num_scalar_prefetch=0,
            grid=grid,
            in_specs=[pl.BlockSpec((tile_rows, lanes), lambda i: (i, 0))],
            out_specs=pl.BlockSpec((tile_rows, lanes), lambda i: (i, 0)),
        ),
        compiler_params=pltpu.CompilerParams(
            dimension_semantics=("parallel",),
            # 4 MiB blocks double-buffered in+out ~= 16 MiB resident; raise the
            # scoped-VMEM limit so this also clears v5e's 16 MiB default.
            vmem_limit_bytes=32 * 1024 * 1024,
        ),
        cost_estimate=pl.CostEstimate(
            flops=3 * max(order, 1) * n_head,
            transcendentals=0,
            bytes_accessed=2 * n_head * itemsize,
        ),
    )(slab)

    flat_out = out.reshape(-1)
    if n_head != n:
        # Head/tail split instead of pad+slice: tail is <128 elements of plain
        # jnp work, avoiding two extra full HBM passes on unaligned sizes.
        tail_out = _taylor_tail(flat[n_head:], order)
        flat_out = jnp.concatenate([flat_out, tail_out])
    return flat_out.reshape(orig_shape)


def taylor_expansion(x, order=ORDER, *, block_bytes=4 * 1024 * 1024):
    return _taylor_expansion_jit(x, order=order, block_bytes=block_bytes)


def taylor_expansion_ref(x, order=ORDER):
    result = x
    for i in range(1, order + 1):
        result = result + jnp.power(x, i) / jnp.asarray(i, dtype=x.dtype)
    return result


def _check(x, order=ORDER, atol=1e-6, rtol=1e-6):
    y = jax.block_until_ready(taylor_expansion(x, order))
    y_ref = taylor_expansion_ref(x, order)
    assert y.shape == x.shape and y.dtype == x.dtype
    assert jnp.allclose(y.astype(jnp.float32), y_ref.astype(jnp.float32),
                        atol=atol, rtol=rtol), "mismatch vs reference"
    return y


if __name__ == "__main__":
    key = jax.random.PRNGKey(0)
    k1, k2, k3, k4, k5 = jax.random.split(key, 5)

    # Required module-shaped input: tiny, single full-array block, grid=(1,).
    x1 = jax.random.normal(k1, (2, 4, 16, 16), dtype=jnp.float32)
    _check(x1)

    # Mid-size aligned input: min-grid-length cap kicks in -> grid=(8,).
    x2 = jax.random.normal(k2, (16, 256, 256), dtype=jnp.float32)
    _check(x2)

    # Lane-aligned but ragged rows: ragged last grid block is edge-masked.
    x3 = jax.random.normal(k3, (8, 4096, 33), dtype=jnp.float32)
    _check(x3)

    # Unaligned element count: exercises the head/tail split path.
    x4 = jax.random.normal(k4, (3, 5, 17, 19), dtype=jnp.float32)
    _check(x4)

    # bf16 path (16-sublane minimum, full-array block).
    x5 = jax.random.normal(k5, (4, 8, 16, 32), dtype=jnp.bfloat16)
    _check(x5, atol=2e-2, rtol=2e-2)

    print("KERNEL_OK")
</pallas_src>

<mosaic_0001>
module attributes {stable_mosaic.version = 11 : i64} {
  func.func @_taylor_kernel(%arg0: i32, %arg1: memref<16x128xf32, #tpu.memory_space<vmem>>, %arg2: memref<16x128xf32, #tpu.memory_space<vmem>>) attributes {dimension_semantics = [#tpu.dimension_semantics<parallel>], iteration_bounds = array<i64: 1>, scalar_prefetch = 0 : i64, scratch_operands = 0 : i64, tpu.core_type = #tpu.core_type<tc>, window_params = [{transform_indices = @transform_0, window_bounds = array<i64: 16, 128>}, {transform_indices = @transform_1, window_bounds = array<i64: 16, 128>}]} {
    %c0 = arith.constant 0 : index
    %c0_0 = arith.constant 0 : index
    %0 = vector.load %arg1[%c0, %c0_0] : memref<16x128xf32, #tpu.memory_space<vmem>>, vector<16x128xf32>
    %1 = arith.addf %0, %0 : vector<16x128xf32>
    %2 = arith.mulf %0, %0 : vector<16x128xf32>
    %cst = arith.constant 5.000000e-01 : f32
    %3 = vector.broadcast %cst : f32 to vector<16x128xf32>
    %4 = arith.mulf %2, %3 : vector<16x128xf32>
    %5 = arith.addf %1, %4 : vector<16x128xf32>
    %c0_1 = arith.constant 0 : index
    %c0_2 = arith.constant 0 : index
    %6 = vector.load %arg2[%c0_1, %c0_2] : memref<16x128xf32, #tpu.memory_space<vmem>>, vector<16x128xf32>
    tpu.vector_store %arg2[%c0_1, %c0_2], %5 {strides = array<i32>} : memref<16x128xf32, #tpu.memory_space<vmem>>, vector<16x128xf32>,
    return
  }
  func.func @transform_0(%arg0: i32) -> (i32, i32) {
    %c0_i32 = arith.constant 0 : i32
    %c0_i32_0 = arith.constant 0 : i32
    return %arg0, %c0_i32 : i32, i32
  }
  func.func @transform_1(%arg0: i32) -> (i32, i32) {
    %c0_i32 = arith.constant 0 : i32
    %c0_i32_0 = arith.constant 0 : i32
    return %arg0, %c0_i32 : i32, i32
  }
}

</mosaic_0001>

<bundles_post_ra>
// kernel: _taylor_expansion_jit.1
= control target key start
LH: loop header
LB: loop body
LE: loop exit
PB: predicated region body
PF: predicated region fallthrough
CT: control target
= control target key end

     0   :  { %s46_s0 = inlined_call_operand.vmem [shape: f32[16,128], index: 0, kind: input, shape index: {}]   ;;  %s47_s1 = inlined_call_operand.vmem [shape: f32[16,128], index: 1, kind: output, shape index: {}]  }
   0x1   :  { %v8_v0 = vld [vmem:[%s46_s0] sm:$0xff]  ;;  %v9_v1 = vld [vmem:[%s46_s0 + $0x8] sm:$0xff] }
   0x2   :  { %v10_v2 = vadd.f32 %v8_v0, %v8_v0  ;;  %v12_v3 = vmul.f32 %v8_v0, %v8_v0  ;;  %v11_v4 = vadd.f32 %v9_v1, %v9_v1  ;;  %v13_v5 = vmul.f32 %v9_v1, %v9_v1 }
   0x4   :  { %v14_v6 = vmul.f32 0.5, %v12_v3  ;;  %v15_v7 = vmul.f32 0.5, %v13_v5 }
   0x6   :  { %v16_v8 = vadd.f32 %v14_v6, %v10_v2  ;;  %v17_v9 = vadd.f32 %v15_v7, %v11_v4 }
   0x8   :  { %18 = vst [vmem:[%s47_s1] sm:$0xff] %v16_v8  ;;  %19 = vst [vmem:[%s47_s1 + $0x8] sm:$0xff] %v17_v9 }

</bundles_post_ra>
